<compile_context>
chip_gen: v6e
topology: v6e:2x2x1
jax: 0.10.0
libtpu: 0.0.40
codegen_flags: <defaults>
</compile_context>

<pallas_src>
import functools

import jax
import jax.numpy as jnp
from jax.experimental import pallas as pl
from jax.experimental.pallas import tpu as pltpu


# --------------------------------------------------------------------------- #
# VMEM budget helpers (v5e/v6e = 128 MiB physical, v7x = 64 MiB per TC).
# --------------------------------------------------------------------------- #
def _vmem_limit_bytes():
    cap = 64 << 20  # conservative default = v7x per-TC VMEM
    try:
        info = pltpu.get_tpu_info()
        for attr in ("vmem_capacity_bytes", "vmem_size_bytes", "vmem_bytes"):
            v = getattr(info, attr, None)
            if v:
                cap = int(v)
                break
    except Exception:
        pass
    # Explicit scoped-VMEM limit: 3/4 of physical, capped at 96 MiB
    # (v5e/v6e -> 96 MiB, v7x -> 48 MiB). Leaves headroom for compiler scratch.
    return int(min(cap * 3 // 4, 96 << 20))


def _pick_tile_hw(hw, c, itemsize, x_budget_bytes, n):
    """Largest multiple-of-128 HW tile fitting the per-x-tile VMEM budget."""
    if hw <= 128:
        return hw  # block dim == full array dim is always legal
    bytes_per_lane = max(1, c * itemsize)
    tile = min(hw, max(128, x_budget_bytes // bytes_per_lane))
    tile = max(128, (tile // 128) * 128)
    # v7x has 2 TensorCores: make sure the parallel grid has >= 2 steps when possible.
    if n * ((hw + tile - 1) // tile) < 2:
        tile = max(128, ((hw // 2) // 128) * 128)
    return tile


# --------------------------------------------------------------------------- #
# Fused single-pass kernel: pool + channel gate + spatial gate + scalings.
# One grid step per batch element; x block = (1, C, HW).
# --------------------------------------------------------------------------- #
def _scse_fused_kernel(x_ref, w1_ref, b1_ref, w2t_ref, b2_ref, ws_ref, o_ref,
                       *, hw, concat):
    x = x_ref[0]                                   # (C, HW), native dtype
    xf = x.astype(jnp.float32)

    # --- channel gate: global avg pool -> fc1 -> relu -> fc2 -> sigmoid (VPU/XLU only) ---
    pooled = jnp.sum(xf, axis=1, keepdims=True) * (1.0 / hw)            # (C, 1) f32
    h = jnp.sum(pooled * w1_ref[...], axis=0, keepdims=True) + b1_ref[...]   # (1, mid)
    h = jnp.maximum(h, 0.0)
    chn_logit = jnp.sum(h * w2t_ref[...], axis=1, keepdims=True) + b2_ref[...]  # (C, 1)
    chn = jax.nn.sigmoid(chn_logit).astype(x.dtype)                     # (C, 1)

    # --- spatial gate: 1x1 conv (C->1) = VPU mul + XLU sublane reduce, f32 accumulate ---
    spa_logit = jnp.sum(xf * ws_ref[...], axis=0, keepdims=True)        # (1, HW) f32
    spa = jax.nn.sigmoid(spa_logit).astype(x.dtype)                     # (1, HW)

    chn_se = x * chn                               # broadcast gate over HW (lanes)
    spa_se = x * spa                               # broadcast gate over C (sublanes)

    if concat:
        o_ref[0, 0] = chn_se.astype(o_ref.dtype)
        o_ref[0, 1] = spa_se.astype(o_ref.dtype)
    else:
        o_ref[0] = (chn_se + spa_se).astype(o_ref.dtype)


# --------------------------------------------------------------------------- #
# Two-pass kernel: channel gate precomputed in wrapper; tiled over HW.
# --------------------------------------------------------------------------- #
def _scse_scale_kernel(x_ref, chn_ref, ws_ref, o_ref, *, concat):
    x = x_ref[0]                                   # (C, T), native dtype
    chn = chn_ref[0]                               # (C, 1), precomputed channel gate

    spa_logit = jnp.sum(x.astype(jnp.float32) * ws_ref[...],
                        axis=0, keepdims=True)     # (1, T) f32 accumulate
    spa = jax.nn.sigmoid(spa_logit).astype(x.dtype)

    chn_se = x * chn
    spa_se = x * spa

    if concat:
        o_ref[0, 0] = chn_se.astype(o_ref.dtype)
        o_ref[0, 1] = spa_se.astype(o_ref.dtype)
    else:
        o_ref[0] = (chn_se + spa_se).astype(o_ref.dtype)


# --------------------------------------------------------------------------- #
# Wrapper
# --------------------------------------------------------------------------- #
def scse_forward(x_nchw, params, *, concat=False, force_two_pass=False):
    """x_nchw: (N, C, H, W). Returns (N, C, H, W), or (N, 2C, H, W) if concat."""
    n, c, h, w = x_nchw.shape
    hw = h * w
    w1, b1, w2, b2, ws = params
    mid = w1.shape[1]
    dtype = x_nchw.dtype
    itemsize = jnp.dtype(dtype).itemsize
    out_factor = 2 if concat else 1
    out_c = out_factor * c

    vmem_limit = _vmem_limit_bytes()
    compiler_params = pltpu.CompilerParams(
        dimension_semantics=("parallel",) if not force_two_pass else ("parallel", "parallel"),
        vmem_limit_bytes=vmem_limit,
    )

    x = x_nchw.reshape(n, c, hw)                   # metadata-only
    ws_f32 = ws.astype(jnp.float32)                # (C, 1)

    # Fused path: per-batch slab (+ double buffers + f32 temps + outputs) must fit VMEM.
    slab = c * hw * itemsize
    fused_ok = (not force_two_pass) and (slab * (2 + 2 * out_factor + 6) <= vmem_limit)

    if fused_ok:
        # Weights reshaped for pure VPU/XLU gate math (no in-kernel transposes, no MXU).
        w1_k = w1.astype(jnp.float32)                       # (C, mid)
        b1_k = b1.reshape(1, mid).astype(jnp.float32)       # (1, mid)
        w2t_k = w2.T.astype(jnp.float32)                    # (C, mid)
        b2_k = b2.reshape(c, 1).astype(jnp.float32)         # (C, 1)

        kernel = functools.partial(_scse_fused_kernel, hw=hw, concat=concat)
        cost = pl.CostEstimate(
            flops=6 * n * c * hw + 4 * n * c * mid,
            transcendentals=n * (hw + c),
            bytes_accessed=n * c * hw * itemsize * (1 + out_factor),
        )
        if concat:
            out_shape = jax.ShapeDtypeStruct((n, 2, c, hw), dtype)
            out_spec = pl.BlockSpec((1, 2, c, hw), lambda b: (b, 0, 0, 0))
        else:
            out_shape = jax.ShapeDtypeStruct((n, c, hw), dtype)
            out_spec = pl.BlockSpec((1, c, hw), lambda b: (b, 0, 0))

        # NOTE: grid=(N,); on v7x with N>=2 batches are sharded across the 2 TCs.
        out = pl.pallas_call(
            kernel,
            out_shape=out_shape,
            grid=(n,),
            in_specs=[
                pl.BlockSpec((1, c, hw), lambda b: (b, 0, 0)),   # x slab (one batch)
                pl.BlockSpec((c, mid), lambda b: (0, 0)),        # fc1 weight
                pl.BlockSpec((1, mid), lambda b: (0, 0)),        # fc1 bias
                pl.BlockSpec((c, mid), lambda b: (0, 0)),        # fc2 weight (transposed)
                pl.BlockSpec((c, 1), lambda b: (0, 0)),          # fc2 bias
                pl.BlockSpec((c, 1), lambda b: (0, 0)),          # spatial_se weight
            ],
            out_specs=out_spec,
            compiler_params=pltpu.CompilerParams(
                dimension_semantics=("parallel",),
                vmem_limit_bytes=vmem_limit,
            ),
            cost_estimate=cost,
        )(x, w1_k, b1_k, w2t_k, b2_k, ws_f32)
    else:
        # --- channel gate: pool -> fc1 -> relu -> fc2 -> sigmoid (tiny, batched, in XLA) ---
        pooled = jnp.mean(x_nchw.astype(jnp.float32), axis=(2, 3))      # (N, C)
        hmid = jnp.maximum(pooled @ w1 + b1, 0.0)                       # (N, mid)
        chn_gate = jax.nn.sigmoid(hmid @ w2 + b2).astype(dtype)         # (N, C)
        chn_gate = chn_gate.reshape(n, c, 1)

        # per-x-tile budget: double-buffered x + out + f32 temps must fit vmem_limit.
        x_budget = max(1 << 20, vmem_limit // (4 * (1 + out_factor) + 4))
        tile = _pick_tile_hw(hw, c, itemsize, x_budget, n)
        grid = (n, pl.cdiv(hw, tile))

        kernel = functools.partial(_scse_scale_kernel, concat=concat)
        cost = pl.CostEstimate(
            flops=5 * n * c * hw,
            transcendentals=n * hw,
            bytes_accessed=n * c * hw * itemsize * (1 + out_factor),
        )
        if concat:
            out_shape = jax.ShapeDtypeStruct((n, 2, c, hw), dtype)
            out_spec = pl.BlockSpec((1, 2, c, tile), lambda b, t: (b, 0, 0, t))
        else:
            out_shape = jax.ShapeDtypeStruct((n, c, hw), dtype)
            out_spec = pl.BlockSpec((1, c, tile), lambda b, t: (b, 0, t))

        out = pl.pallas_call(
            kernel,
            out_shape=out_shape,
            grid=grid,
            in_specs=[
                pl.BlockSpec((1, c, tile), lambda b, t: (b, 0, t)),   # x tile
                pl.BlockSpec((1, c, 1), lambda b, t: (b, 0, 0)),      # channel gate
                pl.BlockSpec((c, 1), lambda b, t: (0, 0)),            # spatial_se weight
            ],
            out_specs=out_spec,
            compiler_params=pltpu.CompilerParams(
                dimension_semantics=("parallel", "parallel"),
                vmem_limit_bytes=vmem_limit,
            ),
            cost_estimate=cost,
        )(x, chn_gate, ws_f32)

    return out.reshape(n, out_c, h, w)


# --------------------------------------------------------------------------- #
# Pure-JAX reference matching the PyTorch forward (NCHW).
# --------------------------------------------------------------------------- #
def scse_reference(x, params, concat=False):
    w1, b1, w2, b2, ws = params
    pooled = jnp.mean(x, axis=(2, 3))                              # (N, C)
    hmid = jnp.maximum(pooled @ w1 + b1, 0.0)                      # (N, mid)
    chn = jax.nn.sigmoid(hmid @ w2 + b2)                           # (N, C)
    chn_se = x * chn[:, :, None, None]
    spa = jax.nn.sigmoid(jnp.einsum("nchw,c->nhw", x, ws[:, 0]))   # (N, H, W)
    spa_se = x * spa[:, None, :, :]
    if concat:
        return jnp.concatenate([chn_se, spa_se], axis=1)
    return chn_se + spa_se


def init_params(key, channels, reduction):
    mid = channels // reduction
    k1, k2, k3, k4, k5 = jax.random.split(key, 5)
    # PyTorch shapes: fc1.weight (mid, C, 1, 1) -> stored transposed as (C, mid), etc.
    w1 = jax.random.normal(k1, (channels, mid), jnp.float32) * 0.1
    b1 = jax.random.normal(k2, (1, mid), jnp.float32) * 0.1
    w2 = jax.random.normal(k3, (mid, channels), jnp.float32) * 0.1
    b2 = jax.random.normal(k4, (1, channels), jnp.float32) * 0.1
    ws = jax.random.normal(k5, (channels, 1), jnp.float32) * 0.1   # spatial_se conv, no bias
    return (w1, b1, w2, b2, ws)


if __name__ == "__main__":
    N, C, H, W = 2, 32, 16, 16
    reduction = 4

    key = jax.random.PRNGKey(0)
    kx, kp = jax.random.split(key)
    x = jax.random.normal(kx, (N, C, H, W), jnp.float32)
    params = init_params(kp, C, reduction)

    # fused single-pass path (default at these shapes)
    for concat in (False, True):
        out = jax.block_until_ready(scse_forward(x, params, concat=concat))
        ref = scse_reference(x, params, concat=concat)
        assert out.shape == ref.shape
        assert jnp.allclose(out, ref, atol=1e-5, rtol=1e-5)

    # two-pass (tiled-HW) path, forced for coverage
    for concat in (False, True):
        out = jax.block_until_ready(
            scse_forward(x, params, concat=concat, force_two_pass=True))
        ref = scse_reference(x, params, concat=concat)
        assert out.shape == ref.shape
        assert jnp.allclose(out, ref, atol=1e-5, rtol=1e-5)

    # non-128-multiple HW with a partial last block (cdiv grid), N=1
    x2 = jax.random.normal(kx, (1, C, 13, 13), jnp.float32)
    out2 = jax.block_until_ready(
        scse_forward(x2, params, concat=False, force_two_pass=True))
    ref2 = scse_reference(x2, params, concat=False)
    assert out2.shape == ref2.shape
    assert jnp.allclose(out2, ref2, atol=1e-5, rtol=1e-5)

    print("KERNEL_OK")
</pallas_src>

<mosaic_0001>
module attributes {stable_mosaic.version = 11 : i64} {
  func.func @_scse_fused_kernel(%arg0: i32, %arg1: memref<1x32x256xf32, #tpu.memory_space<vmem>>, %arg2: memref<32x8xf32, #tpu.memory_space<vmem>>, %arg3: memref<1x8xf32, #tpu.memory_space<vmem>>, %arg4: memref<32x8xf32, #tpu.memory_space<vmem>>, %arg5: memref<32x1xf32, #tpu.memory_space<vmem>>, %arg6: memref<32x1xf32, #tpu.memory_space<vmem>>, %arg7: memref<1x32x256xf32, #tpu.memory_space<vmem>>) attributes {dimension_semantics = [#tpu.dimension_semantics<parallel>], iteration_bounds = array<i64: 2>, scalar_prefetch = 0 : i64, scratch_operands = 0 : i64, tpu.core_type = #tpu.core_type<tc>, window_params = [{transform_indices = @transform_0, window_bounds = array<i64: 1, 32, 256>}, {pipeline_mode = #tpu.pipeline_mode<synchronous>, transform_indices = @transform_1, window_bounds = array<i64: 32, 8>}, {pipeline_mode = #tpu.pipeline_mode<synchronous>, transform_indices = @transform_2, window_bounds = array<i64: 1, 8>}, {pipeline_mode = #tpu.pipeline_mode<synchronous>, transform_indices = @transform_3, window_bounds = array<i64: 32, 8>}, {pipeline_mode = #tpu.pipeline_mode<synchronous>, transform_indices = @transform_4, window_bounds = array<i64: 32, 1>}, {pipeline_mode = #tpu.pipeline_mode<synchronous>, transform_indices = @transform_5, window_bounds = array<i64: 32, 1>}, {transform_indices = @transform_6, window_bounds = array<i64: 1, 32, 256>}]} {
    %c0 = arith.constant 0 : index
    %c0_0 = arith.constant 0 : index
    %c0_1 = arith.constant 0 : index
    %0 = vector.load %arg1[%c0, %c0_0, %c0_1] : memref<1x32x256xf32, #tpu.memory_space<vmem>>, vector<1x32x256xf32>
    %1 = vector.shape_cast %0 : vector<1x32x256xf32> to vector<32x256xf32>
    %cst = arith.constant dense<0.000000e+00> : vector<32xf32>
    %2 = vector.multi_reduction <add>, %1, %cst [1] : vector<32x256xf32> to vector<32xf32>
    %3 = vector.shape_cast %2 : vector<32xf32> to vector<32x1xf32>
    %cst_2 = arith.constant 3.906250e-03 : f32
    %4 = vector.broadcast %cst_2 : f32 to vector<32x1xf32>
    %5 = arith.mulf %3, %4 : vector<32x1xf32>
    %c0_3 = arith.constant 0 : index
    %c0_4 = arith.constant 0 : index
    %6 = vector.load %arg2[%c0_3, %c0_4] : memref<32x8xf32, #tpu.memory_space<vmem>>, vector<32x8xf32>
    %7 = vector.broadcast %5 : vector<32x1xf32> to vector<32x8xf32>
    %8 = arith.mulf %7, %6 : vector<32x8xf32>
    %cst_5 = arith.constant dense<0.000000e+00> : vector<8xf32>
    %9 = vector.multi_reduction <add>, %8, %cst_5 [0] : vector<32x8xf32> to vector<8xf32>
    %10 = vector.shape_cast %9 : vector<8xf32> to vector<1x8xf32>
    %c0_6 = arith.constant 0 : index
    %c0_7 = arith.constant 0 : index
    %11 = vector.load %arg3[%c0_6, %c0_7] : memref<1x8xf32, #tpu.memory_space<vmem>>, vector<1x8xf32>
    %12 = arith.addf %10, %11 : vector<1x8xf32>
    %cst_8 = arith.constant 0.000000e+00 : f32
    %13 = vector.broadcast %cst_8 : f32 to vector<1x8xf32>
    %14 = arith.maximumf %12, %13 : vector<1x8xf32>
    %c0_9 = arith.constant 0 : index
    %c0_10 = arith.constant 0 : index
    %15 = vector.load %arg4[%c0_9, %c0_10] : memref<32x8xf32, #tpu.memory_space<vmem>>, vector<32x8xf32>
    %16 = vector.broadcast %14 : vector<1x8xf32> to vector<32x8xf32>
    %17 = arith.mulf %16, %15 : vector<32x8xf32>
    %cst_11 = arith.constant dense<0.000000e+00> : vector<32xf32>
    %18 = vector.multi_reduction <add>, %17, %cst_11 [1] : vector<32x8xf32> to vector<32xf32>
    %19 = vector.shape_cast %18 : vector<32xf32> to vector<32x1xf32>
    %c0_12 = arith.constant 0 : index
    %c0_13 = arith.constant 0 : index
    %20 = vector.load %arg5[%c0_12, %c0_13] : memref<32x1xf32, #tpu.memory_space<vmem>>, vector<32x1xf32>
    %21 = arith.addf %19, %20 : vector<32x1xf32>
    %22 = arith.negf %21 : vector<32x1xf32>
    %23 = math.exp %22 : vector<32x1xf32>
    %cst_14 = arith.constant 1.000000e+00 : f32
    %24 = vector.broadcast %cst_14 : f32 to vector<32x1xf32>
    %25 = arith.addf %24, %23 : vector<32x1xf32>
    %26 = arith.divf %24, %25 : vector<32x1xf32>
    %c0_15 = arith.constant 0 : index
    %c0_16 = arith.constant 0 : index
    %27 = vector.load %arg6[%c0_15, %c0_16] : memref<32x1xf32, #tpu.memory_space<vmem>>, vector<32x1xf32>
    %28 = vector.broadcast %27 : vector<32x1xf32> to vector<32x256xf32>
    %29 = arith.mulf %1, %28 : vector<32x256xf32>
    %cst_17 = arith.constant dense<0.000000e+00> : vector<256xf32>
    %30 = vector.multi_reduction <add>, %29, %cst_17 [0] : vector<32x256xf32> to vector<256xf32>
    %31 = vector.shape_cast %30 : vector<256xf32> to vector<1x256xf32>
    %32 = arith.negf %31 : vector<1x256xf32>
    %33 = math.exp %32 : vector<1x256xf32>
    %cst_18 = arith.constant 1.000000e+00 : f32
    %34 = vector.broadcast %cst_18 : f32 to vector<1x256xf32>
    %35 = arith.addf %34, %33 : vector<1x256xf32>
    %36 = arith.divf %34, %35 : vector<1x256xf32>
    %37 = vector.broadcast %26 : vector<32x1xf32> to vector<32x256xf32>
    %38 = arith.mulf %1, %37 : vector<32x256xf32>
    %39 = vector.broadcast %36 : vector<1x256xf32> to vector<32x256xf32>
    %40 = arith.mulf %1, %39 : vector<32x256xf32>
    %41 = arith.addf %38, %40 : vector<32x256xf32>
    %c0_19 = arith.constant 0 : index
    %c0_20 = arith.constant 0 : index
    %c0_21 = arith.constant 0 : index
    %42 = vector.load %arg7[%c0_19, %c0_20, %c0_21] : memref<1x32x256xf32, #tpu.memory_space<vmem>>, vector<1x32x256xf32>
    %43 = vector.shape_cast %42 : vector<1x32x256xf32> to vector<32x256xf32>
    %44 = vector.shape_cast %41 : vector<32x256xf32> to vector<1x32x256xf32>
    tpu.vector_store %arg7[%c0_19, %c0_20, %c0_21], %44 {strides = array<i32>} : memref<1x32x256xf32, #tpu.memory_space<vmem>>, vector<1x32x256xf32>,
    return
  }
  func.func @transform_0(%arg0: i32) -> (i32, i32, i32) {
    %c0_i32 = arith.constant 0 : i32
    %c0_i32_0 = arith.constant 0 : i32
    %c0_i32_1 = arith.constant 0 : i32
    return %arg0, %c0_i32, %c0_i32_0 : i32, i32, i32
  }
  func.func @transform_1(%arg0: i32) -> (i32, i32) {
    %c0_i32 = arith.constant 0 : i32
    %c0_i32_0 = arith.constant 0 : i32
    %c0_i32_1 = arith.constant 0 : i32
    return %c0_i32, %c0_i32_0 : i32, i32
  }
  func.func @transform_2(%arg0: i32) -> (i32, i32) {
    %c0_i32 = arith.constant 0 : i32
    %c0_i32_0 = arith.constant 0 : i32
    %c0_i32_1 = arith.constant 0 : i32
    return %c0_i32, %c0_i32_0 : i32, i32
  }
  func.func @transform_3(%arg0: i32) -> (i32, i32) {
    %c0_i32 = arith.constant 0 : i32
    %c0_i32_0 = arith.constant 0 : i32
    %c0_i32_1 = arith.constant 0 : i32
    return %c0_i32, %c0_i32_0 : i32, i32
  }
  func.func @transform_4(%arg0: i32) -> (i32, i32) {
    %c0_i32 = arith.constant 0 : i32
    %c0_i32_0 = arith.constant 0 : i32
    %c0_i32_1 = arith.constant 0 : i32
    return %c0_i32, %c0_i32_0 : i32, i32
  }
  func.func @transform_5(%arg0: i32) -> (i32, i32) {
    %c0_i32 = arith.constant 0 : i32
    %c0_i32_0 = arith.constant 0 : i32
    %c0_i32_1 = arith.constant 0 : i32
    return %c0_i32, %c0_i32_0 : i32, i32
  }
  func.func @transform_6(%arg0: i32) -> (i32, i32, i32) {
    %c0_i32 = arith.constant 0 : i32
    %c0_i32_0 = arith.constant 0 : i32
    %c0_i32_1 = arith.constant 0 : i32
    return %arg0, %c0_i32, %c0_i32_0 : i32, i32, i32
  }
}

</mosaic_0001>

<bundles_post_ra>
// kernel: tpu_custom_call.1
= control target key start
LH: loop header
LB: loop body
LE: loop exit
PB: predicated region body
PF: predicated region fallthrough
CT: control target
= control target key end

     0   :  { %11 = vsyncpa [#allocation3], 0  ;;  %s958_s0 = inlined_call_operand.vmem [shape: f32[2,32,256], index: 0, kind: input, shape index: {}]   ;;  %s959_s1 = inlined_call_operand.vmem [shape: f32[32,8], index: 1, kind: input, shape index: {}]   ;;  %s960_s2 = inlined_call_operand.vmem [shape: f32[1,8], index: 2, kind: input, shape index: {}]   ;;  %s961_s3 = inlined_call_operand.vmem [shape: f32[32,8], index: 3, kind: input, shape index: {}]   ;;  %s962_s4 = inlined_call_operand.vmem [shape: f32[32,1], index: 4, kind: input, shape index: {}]   ;;  %s963_s5 = inlined_call_operand.vmem [shape: f32[32,1], index: 5, kind: input, shape index: {}]   ;;  %s964_s6 = inlined_call_operand.hbm [shape: f32[2,32,256], index: 6, kind: output, shape index: {}]  }
   0x1   :  { %13 = vsyncpa [#allocation3 + $0x1], 0  ;;  %s734_s21 = smov 0   ;;  %s736_s22 = smov 0  }
   0x2   :  { %s738_s23 = smov 0   ;;  %s740_s24 = smov 0  }
   0x3 LB: > { %s755_s25 = sadd.s32 4294967295, %s693_s24   ;;  %s545_s26 = sadd.s32 4294967294, %s693_s24   ;;  %s693_s24 = sphi %s740_s24, %s970_s24   ;;  %s689_s23 = sphi %s738_s23, %s969_s23   ;;  %s685_s22 = sphi %s736_s22, %s968_s22   ;;  %s681_s21 = sphi %s734_s21, %s967_s21  }
   0x4   : > { %s759_s27 = sadd.s32 1, %s693_s24   ;;  %s157_s28 = sadd.s32 1, %s689_s23 }
   0x5   : > { %s154_s29 = ssub.s32 %s693_s24, %s759_s27  ;;  %p167_p0 = scmp.ne.s32.totalorder %s689_s23, %s685_s22 }
   0x6   : > { %p155_p1 = scmp.eq.s32.totalorder %s154_s29, 0  ;;  %p168_p2 = scmp.eq.s32.totalorder %s755_s25, 1 }
   0x7   : > { %p173_p3 = scmp.ne.s32.totalorder %s685_s22, %s681_s21  ;;  %p174_p4 = scmp.eq.s32.totalorder %s545_s26, 1 }
   0x8   : > { %s770_s30 = scalar_select %p155_p1, %s689_s23, %s157_s28  }
   0x9   : > { %p772_p5 = por %p168_p2, %p167_p0  ;;  %p776_p6 = por %p174_p4, %p173_p3 }
   0xa   : > { %p548_p7 = scmp.ge.s32.totalorder %s693_s24, 1  ;;  %p215_p8 = scmp.lt.s32.totalorder %s693_s24, 3 }
   0xc   : > { %p216_p9 = pnand %p548_p7, %p215_p8 }
   0xd   : > { %p245_p10 = scmp.lt.s32.totalorder (!%p216_p9), %s755_s25, 1  ;;  %s242_s18 = sand.u32 (!%p216_p9), 1, %s685_s22  }
   0xe   : > { %219 = sbr.rel (%p216_p9) target bundleno = 527 (0x20f), region = 44  ;;  %s549_s19 = sshll.u32 (!%p216_p9), %s242_s18, 6 }
   0xf   : > { %s885_s20 = scalar_lea.vmem (!%p216_p9), [#allocation2], %s549_s19  ;;  %s564_s26 = sshll.u32 (!%p216_p9), %s755_s25, 10 }
  0x10   : > { %s483_s28 = sshll.u32 (!%p216_p9), %s885_s20, 4  ;;  %s696_s12 = smov (!%p216_p9), [#allocation2]   ;;  %s912_s28 = int_to_ptr.vmem [resolvable:$true] %s483_s28 }
  0x11   : > { %s633_s11 = scalar_lea.vmem (!%p216_p9), %s912_s28, 1024 }
  0x12   : > { %p634_p11 = scmp.ne.s32.totalorder (!%p216_p9), %s912_s28, %s633_s11 }
  0x13   : > { %s246_s9 = scalar_select %p245_p10, %s755_s25, 1  ;;  %v695_v12 = vmov 0   ;;  %v274_v16 = vld [vmem:[%s959_s1] sm:$0xff]  ;;  %v276_v18 = vld [vmem:[%s959_s1 + $0x10] sm:$0xff]  ;;  %v275_v19 = vld [vmem:[%s959_s1 + $0x8] sm:$0xff]  ;;  %vm282_vm0 = vcmask 64512   ;;  %v303_v39 = vlaneseq }
  0x14   : > { %608 = vset.pattern.permute.xlu1 %v695_v12  ;;  %607 = vset.pattern.permute.xlu0 %v695_v12  ;;  %v277_v23 = vld [vmem:[%s959_s1 + $0x18] sm:$0xff]  ;;  %v296_v43 = vld [vmem:[%s960_s2] sm:$0x1]  ;;  %v300_v48 = vld [vmem:[%s961_s3 + $0x8] sm:$0xff]  ;;  %s918_s25 = scalar_lea.sflag [#allocation3], %s242_s18  ;;  %p635_p12 = pnand %p634_p11, %p772_p5 }
  0x15   : > { %s563_s10 = sshll.u32 %s246_s9, 6  ;;  %v304_v42 = vshrl.u32 %v303_v39, 7  ;;  %v299_v49 = vld [vmem:[%s961_s3] sm:$0xff]  ;;  %v302_v51 = vld [vmem:[%s961_s3 + $0x18] sm:$0xff]  ;;  %v301_v52 = vld [vmem:[%s961_s3 + $0x10] sm:$0xff] }
  0x16   : > { %s249_s13 = scalar_lea.vmem %s958_s0, %s563_s10  ;;  %v356_v61 = vld [vmem:[%s963_s5 + $0x8] sm:$0xff]  ;;  %v357_v62 = vld [vmem:[%s963_s5 + $0x10] sm:$0xff]  ;;  %v355_v63 = vld [vmem:[%s963_s5] sm:$0xff]  ;;  %s910_s10 = scalar_lea.hbm %s964_s6, %s564_s26 }
  0x17   : > { %v787_v0 = vld [vmem:[%s249_s13] sm:$0xff]  ;;  %v789_v1 = vld [vmem:[%s249_s13 + $0x8] sm:$0xff]  ;;  %v797_v5 = vld [vmem:[%s249_s13 + $0x10] sm:$0xff]  ;;  %v305_v46 = vsub.s32 0, %v304_v42  ;;  %p636_p13 = pneg %p635_p12 }
  0x18   : > { %v791_v2 = vld [vmem:[%s249_s13 + $0x20] sm:$0xff]  ;;  %v258_v3 = vadd.f32 %v789_v1, %v787_v0  ;;  %v795_v4 = vld [vmem:[%s249_s13 + $0x28] sm:$0xff]  ;;  %v799_v6 = vld [vmem:[%s249_s13 + $0x18] sm:$0xff] }
  0x19   : > { %v264_v7 = vadd.f32 %v795_v4, %v791_v2  ;;  %v803_v8 = vld [vmem:[%s249_s13 + $0x30] sm:$0xff]  ;;  %v805_v9 = vld [vmem:[%s249_s13 + $0x38] sm:$0xff]  ;;  %v261_v10 = vadd.f32 %v799_v6, %v797_v5  ;;  %s637_s13 = sshll.u32 %s696_s12, 4  ;;  %s638_s13 = int_to_ptr.vmem [resolvable:$false] %s637_s13 }
  0x1a   : > { %259 = vadd.xlane.f32.xlu0 %v258_v3  ;;  %v267_v11 = vadd.f32 %v805_v9, %v803_v8  ;;  %v358_v3 = vld [vmem:[%s963_s5 + $0x18] sm:$0xff]  ;;  %s639_s14 = scalar_lea.vmem %s638_s13, 2048  ;;  %p640_p0 = scmp.lt.s32.totalorder %s912_s28, %s638_s13 }
  0x1b   : > { %265 = vadd.xlane.f32.xlu1 %v264_v7  ;;  %v324_v7 = vld [vmem:[%s962_s4 + $0x8] sm:$0xff]  ;;  %p641_p1 = scmp.lt.s32.totalorder %s639_s14, %s633_s11 }
  0x1d   : > { %p642_p2 = por %p641_p1, %p640_p0 }
  0x1e   : > { %262 = vadd.xlane.f32.xlu0 %v261_v10  ;;  %v323_v10 = vld [vmem:[%s962_s4] sm:$0xff] }
  0x1f   : > { %268 = vadd.xlane.f32.xlu1 %v267_v11  ;;  %p643_p3 = pnand %p642_p2, %p636_p13 }
  0xa3   : > { %v260_v13 = vpop.xlane.xlu0 %259 }
  0xa4   : > { %v270_v14 = vmul.f32 0.00390625, %v260_v13  ;;  %v266_v15 = vpop.xlane.xlu1 %265 }
  0xa5   : > { %v272_v17 = vmul.f32 0.00390625, %v266_v15  ;;  %v325_v15 = vld [vmem:[%s962_s4 + $0x10] sm:$0xff] }
  0xa6   : > { %v278_v21 = vmul.f32 %v274_v16, %v270_v14 }
  0xa7   : > { %v263_v20 = vpop.xlane.xlu0 %262  ;;  %v280_v26 = vmul.f32 %v276_v18, %v272_v17  ;;  %v326_v18 = vld [vmem:[%s962_s4 + $0x18] sm:$0xff] }
  0xa8   : > { %v271_v22 = vmul.f32 0.00390625, %v263_v20  ;;  %v269_v24 = vpop.xlane.xlu1 %268  ;;  %v283_v29 = vsel %vm282_vm0, %v278_v21, 0.0 }
  0xa9   : > { %v273_v25 = vmul.f32 0.00390625, %v269_v24  ;;  %v286_v32 = vsel %vm282_vm0, %v280_v26, 0.0 }
  0xaa   : > { %v279_v27 = vmul.f32 %v275_v19, %v271_v22 }
  0xab   : > { %v281_v28 = vmul.f32 %v277_v23, %v273_v25 }
  0xac   : > { %v284_v30 = vsel %vm282_vm0, %v279_v27, 0.0 }
  0xad   : > { %v285_v31 = vadd.f32 %v284_v30, %v283_v29  ;;  %v288_v33 = vsel %vm282_vm0, %v281_v28, 0.0 }
  0xaf   : > { %v287_v34 = vadd.f32 %v286_v32, %v285_v31 }
  0xb1   : > { %v289_v35 = vadd.f32 %v288_v33, %v287_v34 }
  0xb3   : > { %v290_v36 = vrot.slane %v289_v35, 4 }
  0xb5   : > { %v291_v37 = vadd.f32 %v290_v36, %v289_v35 }
  0xb7   : > { %v292_v38 = vrot.slane %v291_v37, 2 }
  0xb9   : > { %v293_v40 = vadd.f32 %v292_v38, %v291_v37 }
  0xbb   : > { %v294_v41 = vrot.slane %v293_v40, 1 }
  0xbd   : > { %v295_v44 = vadd.f32 %v294_v41, %v293_v40 }
  0xbf   : > { %v297_v45 = vadd.f32 %v296_v43, %v295_v44 }
  0xc1   : > { %v298_v47 = vmax.f32 %v297_v45, 0.0 }
  0xc3   : > { %v306_v50 = vrot.slane %v298_v47, %v305_v46 }
  0xc5   : > { %v308_v53 = vmul.f32 %v306_v50, %v300_v48  ;;  %v307_v54 = vmul.f32 %v306_v50, %v299_v49  ;;  %v310_v57 = vmul.f32 %v306_v50, %v302_v51  ;;  %v309_v58 = vmul.f32 %v306_v50, %v301_v52 }
  0xc7   : > { %v314_v55 = vsel %vm282_vm0, %v308_v53, 0.0  ;;  %v311_v56 = vsel %vm282_vm0, %v307_v54, 0.0  ;;  %v320_v59 = vsel %vm282_vm0, %v310_v57, 0.0  ;;  %v317_v60 = vsel %vm282_vm0, %v309_v58, 0.0 }
  0xc8   : > { %315 = vadd.xlane.f32.xlu1 %v314_v55  ;;  %312 = vadd.xlane.f32.xlu0 %v311_v56 }
  0xcc   : > { %321 = vadd.xlane.f32.xlu1 %v320_v59  ;;  %318 = vadd.xlane.f32.xlu0 %v317_v60 }
  0xdd   : > { %366 = vperm.xlu1 %608, %v356_v61  }
  0xe1   : > { %371 = vperm.xlu1 %608, %v357_v62  }
  0xe2   : > { %361 = vperm.xlu0 %607, %v355_v63  }
  0xe5   : > { %376 = vperm.xlu1 %608, %v358_v3  }
 0x151   : > { %v316_v11 = vpop.xlane.xlu1 %315  ;;  %v313_v12 = vpop.xlane.xlu0 %312 }
 0x152   : > { %v328_v13 = vadd.f32 %v324_v7, %v316_v11  ;;  %v327_v14 = vadd.f32 %v323_v10, %v313_v12 }
 0x154   : > { %v553_v16 = vmul.f32 -1.442695, %v328_v13  ;;  %v552_v17 = vmul.f32 -1.442695, %v327_v14 }
 0x155   : > { %v322_v19 = vpop.xlane.xlu1 %321  ;;  %v319_v20 = vpop.xlane.xlu0 %318 }
 0x156   : > { %609 = vpow2.f32 %v553_v16  ;;  %v329_v21 = vadd.f32 %v325_v15, %v319_v20  ;;  %v330_v22 = vadd.f32 %v326_v18, %v322_v19 }
 0x157   : > { %611 = vpow2.f32 %v552_v17 }
 0x158   : > { %v554_v23 = vmul.f32 -1.442695, %v329_v21  ;;  %v555_v24 = vmul.f32 -1.442695, %v330_v22 }
 0x159   : > { %v367_v37 = vpop.permute.xlu1 %366 }
 0x15a   : > { %613 = vpow2.f32 %v554_v23  ;;  %v381_v40 = vmul.f32 %v367_v37, %v797_v5  ;;  %v382_v42 = vmul.f32 %v367_v37, %v799_v6 }
 0x15b   : > { %615 = vpow2.f32 %v555_v24 }
 0x15d   : > { %v362_v38 = vpop.permute.xlu0 %361  ;;  %v372_v39 = vpop.permute.xlu1 %371 }
 0x15e   : > { %v379_v41 = vmul.f32 %v362_v38, %v787_v0  ;;  %v380_v43 = vmul.f32 %v362_v38, %v789_v1  ;;  %v383_v44 = vmul.f32 %v372_v39, %v791_v2  ;;  %v384_v46 = vmul.f32 %v372_v39, %v795_v4 }
 0x160   : > { %v387_v45 = vadd.f32 %v381_v40, %v379_v41  ;;  %v396_v47 = vadd.f32 %v382_v42, %v380_v43 }
 0x161   : > { %v377_v48 = vpop.permute.xlu1 %376 }
 0x162   : > { %v388_v49 = vadd.f32 %v387_v45, %v383_v44  ;;  %v385_v50 = vmul.f32 %v377_v48, %v803_v8  ;;  %v397_v51 = vadd.f32 %v396_v47, %v384_v46  ;;  %v386_v52 = vmul.f32 %v377_v48, %v805_v9 }
 0x163   : > { %v610_v25 = vpop.eup %609 }
 0x164   : > { %v612_v26 = vpop.eup %611  ;;  %v344_v28 = vadd.f32 1.0, %v610_v25  ;;  %v389_v53 = vadd.f32 %v388_v49, %v385_v50  ;;  %v398_v54 = vadd.f32 %v397_v51, %v386_v52 }
 0x165   : > { %v343_v27 = vadd.f32 1.0, %v612_v26 }
 0x166   : > { %v390_v55 = vrot.slane %v389_v53, 4  ;;  %v399_v56 = vrot.slane %v398_v54, 4 }
 0x167   : > { %617 = vrcp.f32 %v343_v27  ;;  %v614_v29 = vpop.eup %613 }
 0x168   : > { %619 = vrcp.f32 %v344_v28  ;;  %v345_v30 = vadd.f32 1.0, %v614_v29  ;;  %v616_v31 = vpop.eup %615  ;;  %v391_v57 = vadd.f32 %v390_v55, %v389_v53  ;;  %v400_v58 = vadd.f32 %v399_v56, %v398_v54 }
 0x169   : > { %v346_v32 = vadd.f32 1.0, %v616_v31 }
 0x16a   : > { %621 = vrcp.f32 %v345_v30  ;;  %v392_v59 = vrot.slane %v391_v57, 2  ;;  %v401_v60 = vrot.slane %v400_v58, 2 }
 0x16b   : > { %623 = vrcp.f32 %v346_v32 }
 0x16c   : > { %v393_v61 = vadd.f32 %v392_v59, %v391_v57  ;;  %v402_v62 = vadd.f32 %v401_v60, %v400_v58 }
 0x16e   : > { %v394_v63 = vrot.slane %v393_v61, 1  ;;  %v403_v3 = vrot.slane %v402_v62, 1 }
 0x170   : > { %v395_v7 = vadd.f32 %v394_v63, %v393_v61  ;;  %v404_v10 = vadd.f32 %v403_v3, %v402_v62 }
 0x172   : > { %v556_v11 = vmul.f32 -1.442695, %v395_v7  ;;  %v557_v12 = vmul.f32 -1.442695, %v404_v10 }
 0x174   : > { %v618_v33 = vpop.eup %617  ;;  %625 = vpow2.f32 %v556_v11 }
 0x175   : > { %419 = vperm.xlu1 %608, %v618_v33   ;;  %v620_v34 = vpop.eup %619  ;;  %627 = vpow2.f32 %v557_v12 }
 0x177   : > { %v622_v35 = vpop.eup %621 }
 0x178   : > { %v624_v36 = vpop.eup %623 }
 0x179   : > { %424 = vperm.xlu1 %608, %v620_v34  }
 0x17d   : > { %429 = vperm.xlu1 %608, %v622_v35  }
 0x181   : > { %434 = vperm.xlu1 %608, %v624_v36   ;;  %v626_v13 = vpop.eup %625 }
 0x182   : > { %v628_v14 = vpop.eup %627  ;;  %v411_v15 = vadd.f32 1.0, %v626_v13 }
 0x183   : > { %v412_v16 = vadd.f32 1.0, %v628_v14 }
 0x184   : > { %629 = vrcp.f32 %v411_v15 }
 0x185   : > { %631 = vrcp.f32 %v412_v16 }
 0x191   : > { %v630_v17 = vpop.eup %629 }
 0x192   : > { %v632_v18 = vpop.eup %631  ;;  %v445_v22 = vmul.f32 %v630_v17, %v787_v0  ;;  %v449_v34 = vmul.f32 %v630_v17, %v791_v2  ;;  %v451_v39 = vmul.f32 %v630_v17, %v803_v8 }
 0x193   : > { %v446_v23 = vmul.f32 %v632_v18, %v789_v1  ;;  %v450_v35 = vmul.f32 %v632_v18, %v795_v4 }
 0x1f0   : > { %v420_v19 = vpop.permute.xlu1 %419 }
 0x1f1   : > { %v437_v20 = vmul.f32 %v420_v19, %v787_v0  ;;  %v438_v21 = vmul.f32 %v420_v19, %v789_v1  ;;  %v447_v0 = vmul.f32 %v630_v17, %v797_v5  ;;  %v448_v1 = vmul.f32 %v632_v18, %v799_v6 }
 0x1f3   : > { %v453_v24 = vadd.f32 %v445_v22, %v437_v20  ;;  %v454_v25 = vadd.f32 %v446_v23, %v438_v21 }
 0x1f4   : > { %v425_v26 = vpop.permute.xlu1 %424 }
 0x1f5   : > { %461 = vst [vmem:[%s885_s20] sm:$0xff] %v453_v24  ;;  %462 = vst [vmem:[%s885_s20 + $0x8] sm:$0xff] %v454_v25  ;;  %v439_v27 = vmul.f32 %v425_v26, %v797_v5  ;;  %v440_v28 = vmul.f32 %v425_v26, %v799_v6 }
 0x1f7   : > { %v455_v29 = vadd.f32 %v447_v0, %v439_v27  ;;  %v456_v30 = vadd.f32 %v448_v1, %v440_v28 }
 0x1f8   : > { %v430_v31 = vpop.permute.xlu1 %429 }
 0x1f9   : > { %463 = vst [vmem:[%s885_s20 + $0x10] sm:$0xff] %v455_v29  ;;  %464 = vst [vmem:[%s885_s20 + $0x18] sm:$0xff] %v456_v30  ;;  %v441_v32 = vmul.f32 %v430_v31, %v791_v2  ;;  %v442_v33 = vmul.f32 %v430_v31, %v795_v4  ;;  %v452_v2 = vmul.f32 %v632_v18, %v805_v9 }
 0x1fb   : > { %v457_v36 = vadd.f32 %v449_v34, %v441_v32  ;;  %v458_v5 = vadd.f32 %v450_v35, %v442_v33 }
 0x1fc   : > { %v435_v6 = vpop.permute.xlu1 %434 }
 0x1fd   : > { %465 = vst [vmem:[%s885_s20 + $0x20] sm:$0xff] %v457_v36  ;;  %466 = vst [vmem:[%s885_s20 + $0x28] sm:$0xff] %v458_v5  ;;  %v443_v37 = vmul.f32 %v435_v6, %v803_v8  ;;  %v444_v38 = vmul.f32 %v435_v6, %v805_v9 }
 0x1ff   : > { %v459_v4 = vadd.f32 %v451_v39, %v443_v37  ;;  %v460_v40 = vadd.f32 %v452_v2, %v444_v38 }
 0x201   : > { %467 = vst [vmem:[%s885_s20 + $0x30] sm:$0xff] %v459_v4  ;;  %468 = vst [vmem:[%s885_s20 + $0x38] sm:$0xff] %v460_v40 }
 0x202   : > { %646 = shalt.err (!%p643_p3)
}
 0x203   : > { %s647_s15 = scalar_lea.hbm %s910_s10, 1024  ;;  %s651_s18 = scalar_lea.hbm %s964_s6, 2048 }
 0x204   : > { %p648_p4 = scmp.ne.s32.totalorder %s910_s10, %s647_s15  ;;  %p652_p9 = scmp.lt.s32.totalorder %s910_s10, %s964_s6 }
 0x205   : > { %p653_p10 = scmp.lt.s32.totalorder %s651_s18, %s647_s15 }
 0x206   : > { %p649_p7 = pnand %p648_p4, %p772_p5 }
 0x207   : > { %p654_p11 = por %p653_p10, %p652_p9 }
 0x208   : > { %p650_p8 = pneg %p649_p7 }
 0x20a   : > { %p655_p12 = pnand %p654_p11, %p650_p8 }
 0x20c   : > { %658 = shalt.err (!%p655_p12)
}
 0x20d   : > { %s697_s26 = smov 256   ;;  %s698_s29 = smov 16  }
 0x20e   : > { %565 = dma.vmem_to_hbm [thread:$0]  (%p772_p5), %s912_s28, 1024, %s910_s10, %s918_s25, %s697_s26, %s697_s26, %s698_s29  }
 0x20f PF: > { %p571_p13 = scmp.ge.s32.totalorder %s693_s24, 2  ;;  %s498_s9 = sand.u32 1, %s681_s21  }
 0x210   : > { %s499_s11 = scalar_lea.sflag [#allocation3], %s498_s9 }
 0x211   : > { %p568_p0 = pnand %p571_p13, %p776_p6 }
 0x213   : > { %p569_p1 = pneg %p568_p0 }
 0x215   : > { %676 = dma.done.wait (%p569_p1), %s499_s11, 1024  }
 0x216   : > { %678 = vsyncadd (%p569_p1), %s499_s11, 4294966272  ;;  %p16_p2 = scmp.ge.s32.totalorder %s759_s27, 4   ;;  %s967_s21 = smov %s685_s22 }
 0x217   : > { %s968_s22 = smov %s689_s23  ;;  %s969_s23 = smov %s770_s30 }
 0x218   : > { %s970_s24 = smov %s759_s27  ;;  %18 = sbr.rel (!%p16_p2) target bundleno = 3 (0x3), region = 79 }
 0x21d   :  { %504 = vsyncpa [#allocation3], 1 }
 0x21e   :  { %506 = vsyncpa [#allocation3 + $0x1], 1 }

</bundles_post_ra>
